<compile_context>
chip_gen: v5e
topology: v5e:2x2
jax: 0.10.0
libtpu: 0.0.40
codegen_flags: <defaults>
</compile_context>

<pallas_src>
import functools

import jax
import jax.numpy as jnp
from jax.experimental import pallas as pl
from jax.experimental.pallas import tpu as pltpu


def rotary_kernel(x_ref, cos_ref, sin_ref, o_ref, *, head_dim: int):
    # x_ref / o_ref: (Bt, Tt, H*D) lane-dense blocks; cos_ref / sin_ref: (Tt, H*D).
    half = head_dim // 2

    x = x_ref[...].astype(jnp.float32)
    cos = cos_ref[...].astype(jnp.float32)[None]   # (1, Tt, HD) -> broadcasts over Bt
    sin = sin_ref[...].astype(jnp.float32)[None]

    # Rotate-half partners via two static lane rolls:
    #   x_fwd[c] = x[c + half]  -> correct partner for first-half lanes of each head
    #   x_bwd[c] = x[c - half]  -> correct partner for second-half lanes of each head
    # NOTE: the global rolls wrap across head boundaries, but the lane select
    # below only ever reads each roll where the partner lies inside the same
    # head (d+half < D for d < half, d-half >= 0 for d >= half), so the wrap
    # never leaks into the output.  Keep this invariant if the layout changes.
    x_fwd = jnp.roll(x, -half, axis=-1)
    x_bwd = jnp.roll(x, half, axis=-1)

    lane = jax.lax.broadcasted_iota(jnp.int32, x.shape, dimension=x.ndim - 1)
    if (head_dim & (head_dim - 1)) == 0:            # static branch (power of two)
        lane_in_head = jax.lax.bitwise_and(lane, head_dim - 1)
    else:
        lane_in_head = lane % head_dim
    first_half = lane_in_head < half
    x_rot = jnp.where(first_half, x_fwd, x_bwd)

    # y1 = x1*cos + x2*sin ; y2 = -x1*sin + x2*cos  (sign folded into sin table).
    o_ref[...] = (x * cos + x_rot * sin).astype(o_ref.dtype)


@functools.lru_cache(maxsize=16)
def _rotary_tables(seq_len: int, dim: int, n_heads: int, base: float, dtype_name: str):
    """Full-width (T, H*dim) tables for the lane-dense (B, T, H*dim) layout.

    cos_full  [t, h*dim + d] =  cos(freqs[t, d % (dim//2)])
    sin_signed[t, h*dim + d] = +sin(freqs[t, d])            if d <  dim//2
                               -sin(freqs[t, d - dim//2])   if d >= dim//2
    """
    half = dim // 2
    inv_freq = (1.0 / base) ** (jnp.arange(0, dim, 2, dtype=jnp.float32) / dim)
    t = jnp.arange(seq_len, dtype=jnp.float32)
    freqs = jnp.outer(t, inv_freq)                       # (T, half), f32
    cos = jnp.cos(freqs)
    sin = jnp.sin(freqs)
    cos_full = jnp.tile(cos, (1, 2 * n_heads))                               # (T, H*dim)
    sin_signed = jnp.tile(jnp.concatenate([sin, -sin], axis=-1), (1, n_heads))  # (T, H*dim)
    dt = jnp.dtype(dtype_name)
    return cos_full.astype(dt), sin_signed.astype(dt)


def rotary(x: jax.Array, base: float = 10000.0) -> jax.Array:
    """Matches PyTorch Rotary.forward: x is [B, T, H, D], rotation along D."""
    B, T, H, D = x.shape
    assert D % 2 == 0, "RoPE head dim must be even"
    HD = H * D
    itemsize = jnp.dtype(x.dtype).itemsize

    cos_full, sin_signed = _rotary_tables(T, D, H, float(base), str(jnp.dtype(x.dtype)))

    # Free, contiguous reshape to the lane-dense view.
    x2d = x.reshape(B, T, HD)

    # ---- VMEM-capacity-aware tile budget -----------------------------------
    try:
        vmem_cap = pltpu.get_tpu_info().vmem_capacity_bytes   # 64 MiB v7x, 128 MiB v5e/v6e
    except Exception:
        vmem_cap = 64 * 1024 * 1024                            # conservative fallback
    live_budget = vmem_cap // 6                                # bytes of live blocks

    # dtype-native sublane multiple: 8 (f32) / 16 (bf16) / 32 (int8, fp8).
    sublane = max(8, 32 // itemsize)

    # With Bt = 1 there are ~8 live (Tt, HD) blocks (x, out, cos, sin; double-buffered).
    rows = max(sublane, (live_budget // (8 * HD * itemsize)) // sublane * sublane)
    if T <= rows:
        Tt = T                                   # full dim -> no (8,128) divisibility issue
        # Whole sequence fits in one tile: also block over batch so each grid
        # step moves a big slab (amortizes per-step overhead on short T).
        Bt = max(1, min(B, live_budget // (4 * Tt * HD * itemsize) - 1))
    else:
        Tt = rows
        Bt = 1

    grid = (pl.cdiv(T, Tt), B // Bt if B % Bt == 0 else pl.cdiv(B, Bt))

    kernel = functools.partial(rotary_kernel, head_dim=D)

    out = pl.pallas_call(
        kernel,
        out_shape=jax.ShapeDtypeStruct((B, T, HD), x.dtype),
        grid_spec=pltpu.PrefetchScalarGridSpec(
            num_scalar_prefetch=0,
            grid=grid,                            # (t tiles, batch tiles); batch innermost
            in_specs=[
                pl.BlockSpec((Bt, Tt, HD), lambda t, b: (b, t, 0)),
                # Table block index is constant across the inner batch loop ->
                # Pallas keeps cos/sin resident in VMEM (no re-DMA per batch).
                pl.BlockSpec((Tt, HD), lambda t, b: (t, 0)),
                pl.BlockSpec((Tt, HD), lambda t, b: (t, 0)),
            ],
            out_specs=pl.BlockSpec((Bt, Tt, HD), lambda t, b: (b, t, 0)),
        ),
        compiler_params=pltpu.CompilerParams(
            # Shard megacore on the outer t axis; keep batch "arbitrary" so the
            # table-reuse streak isn't broken per core.
            dimension_semantics=("parallel", "arbitrary"),
            vmem_limit_bytes=int(min(vmem_cap // 2, 64 * 1024 * 1024)),
        ),
    )(x2d, cos_full, sin_signed)

    return out.reshape(B, T, H, D)


def rotary_ref(x: jax.Array, base: float = 10000.0) -> jax.Array:
    """Pure-JAX reference mirroring the PyTorch forward (same sign convention)."""
    B, T, H, D = x.shape
    half = D // 2
    inv_freq = (1.0 / base) ** (jnp.arange(0, D, 2, dtype=jnp.float32) / D)
    t = jnp.arange(T, dtype=jnp.float32)
    freqs = jnp.outer(t, inv_freq)
    cos = jnp.cos(freqs)[None, :, None, :]
    sin = jnp.sin(freqs)[None, :, None, :]
    x1 = x[..., :half].astype(jnp.float32)
    x2 = x[..., half:].astype(jnp.float32)
    y1 = x1 * cos + x2 * sin
    y2 = x1 * (-sin) + x2 * cos
    return jnp.concatenate([y1, y2], axis=-1).astype(x.dtype)


if __name__ == "__main__":
    key = jax.random.PRNGKey(0)
    B, T, H, D = 2, 8, 4, 32  # batch, seq, heads, head_dim  (H*D = 128 lanes)
    x = jax.random.normal(key, (B, T, H, D), dtype=jnp.float32)

    out = jax.block_until_ready(rotary(x))
    ref = rotary_ref(x)

    assert out.shape == ref.shape and out.dtype == ref.dtype
    max_err = float(jnp.max(jnp.abs(out.astype(jnp.float32) - ref.astype(jnp.float32))))
    assert jnp.allclose(out, ref, atol=1e-5, rtol=1e-5), max_err

    print("KERNEL_OK")
</pallas_src>

<mosaic_0001>
module attributes {stable_mosaic.version = 11 : i64} {
  func.func @rotary_kernel(%arg0: i32, %arg1: i32, %arg2: memref<2x8x128xf32, #tpu.memory_space<vmem>>, %arg3: memref<8x128xf32, #tpu.memory_space<vmem>>, %arg4: memref<8x128xf32, #tpu.memory_space<vmem>>, %arg5: memref<2x8x128xf32, #tpu.memory_space<vmem>>) attributes {dimension_semantics = [#tpu.dimension_semantics<parallel>, #tpu.dimension_semantics<arbitrary>], iteration_bounds = array<i64: 1, 1>, scalar_prefetch = 0 : i64, scratch_operands = 0 : i64, tpu.core_type = #tpu.core_type<tc>, window_params = [{transform_indices = @transform_0, window_bounds = array<i64: 2, 8, 128>}, {transform_indices = @transform_1, window_bounds = array<i64: 8, 128>}, {transform_indices = @transform_2, window_bounds = array<i64: 8, 128>}, {transform_indices = @transform_3, window_bounds = array<i64: 2, 8, 128>}]} {
    %c0 = arith.constant 0 : index
    %c0_0 = arith.constant 0 : index
    %c0_1 = arith.constant 0 : index
    %0 = vector.load %arg2[%c0, %c0_0, %c0_1] : memref<2x8x128xf32, #tpu.memory_space<vmem>>, vector<2x8x128xf32>
    %c0_2 = arith.constant 0 : index
    %c0_3 = arith.constant 0 : index
    %1 = vector.load %arg3[%c0_2, %c0_3] : memref<8x128xf32, #tpu.memory_space<vmem>>, vector<8x128xf32>
    %2 = vector.shape_cast %1 : vector<8x128xf32> to vector<1x8x128xf32>
    %c0_4 = arith.constant 0 : index
    %c0_5 = arith.constant 0 : index
    %3 = vector.load %arg4[%c0_4, %c0_5] : memref<8x128xf32, #tpu.memory_space<vmem>>, vector<8x128xf32>
    %4 = vector.shape_cast %3 : vector<8x128xf32> to vector<1x8x128xf32>
    %5 = vector.extract_strided_slice %0 {offsets = [0, 0, 16], sizes = [2, 8, 112], strides = [1, 1, 1]} : vector<2x8x128xf32> to vector<2x8x112xf32>
    %6 = vector.extract_strided_slice %0 {offsets = [0, 0, 0], sizes = [2, 8, 16], strides = [1, 1, 1]} : vector<2x8x128xf32> to vector<2x8x16xf32>
    %7 = tpu.concatenate %5, %6 in 2 : vector<2x8x112xf32>, vector<2x8x16xf32> -> vector<2x8x128xf32>
    %8 = vector.extract_strided_slice %0 {offsets = [0, 0, 112], sizes = [2, 8, 16], strides = [1, 1, 1]} : vector<2x8x128xf32> to vector<2x8x16xf32>
    %9 = vector.extract_strided_slice %0 {offsets = [0, 0, 0], sizes = [2, 8, 112], strides = [1, 1, 1]} : vector<2x8x128xf32> to vector<2x8x112xf32>
    %10 = tpu.concatenate %8, %9 in 2 : vector<2x8x16xf32>, vector<2x8x112xf32> -> vector<2x8x128xf32>
    %11 = tpu.iota {dimensions = array<i32: 2>} : vector<2x8x128xi32>
    %c31_i32 = arith.constant 31 : i32
    %12 = vector.broadcast %c31_i32 : i32 to vector<2x8x128xi32>
    %13 = arith.andi %11, %12 : vector<2x8x128xi32>
    %c16_i32 = arith.constant 16 : i32
    %14 = vector.broadcast %c16_i32 : i32 to vector<2x8x128xi32>
    %15 = arith.cmpi slt, %13, %14 : vector<2x8x128xi32>
    %16 = arith.select %15, %7, %10 : vector<2x8x128xi1>, vector<2x8x128xf32>
    %17 = vector.broadcast %2 : vector<1x8x128xf32> to vector<2x8x128xf32>
    %18 = arith.mulf %0, %17 : vector<2x8x128xf32>
    %19 = vector.broadcast %4 : vector<1x8x128xf32> to vector<2x8x128xf32>
    %20 = arith.mulf %16, %19 : vector<2x8x128xf32>
    %21 = arith.addf %18, %20 : vector<2x8x128xf32>
    %c0_6 = arith.constant 0 : index
    %c0_7 = arith.constant 0 : index
    %c0_8 = arith.constant 0 : index
    %22 = vector.load %arg5[%c0_6, %c0_7, %c0_8] : memref<2x8x128xf32, #tpu.memory_space<vmem>>, vector<2x8x128xf32>
    tpu.vector_store %arg5[%c0_6, %c0_7, %c0_8], %21 {strides = array<i32>} : memref<2x8x128xf32, #tpu.memory_space<vmem>>, vector<2x8x128xf32>,
    return
  }
  func.func @transform_0(%arg0: i32, %arg1: i32) -> (i32, i32, i32) {
    %c0_i32 = arith.constant 0 : i32
    %c0_i32_0 = arith.constant 0 : i32
    return %arg1, %arg0, %c0_i32 : i32, i32, i32
  }
  func.func @transform_1(%arg0: i32, %arg1: i32) -> (i32, i32) {
    %c0_i32 = arith.constant 0 : i32
    %c0_i32_0 = arith.constant 0 : i32
    return %arg0, %c0_i32 : i32, i32
  }
  func.func @transform_2(%arg0: i32, %arg1: i32) -> (i32, i32) {
    %c0_i32 = arith.constant 0 : i32
    %c0_i32_0 = arith.constant 0 : i32
    return %arg0, %c0_i32 : i32, i32
  }
  func.func @transform_3(%arg0: i32, %arg1: i32) -> (i32, i32, i32) {
    %c0_i32 = arith.constant 0 : i32
    %c0_i32_0 = arith.constant 0 : i32
    return %arg1, %arg0, %c0_i32 : i32, i32, i32
  }
}

</mosaic_0001>

<bundles_post_ra>
// kernel: tpu_custom_call.1
= control target key start
LH: loop header
LB: loop body
LE: loop exit
PB: predicated region body
PF: predicated region fallthrough
CT: control target
= control target key end

     0   :  { %8 = vsyncpa [#allocation3], 0  ;;  %s274_s0 = inlined_call_operand.hbm [shape: f32[2,8,128], index: 0, kind: input, shape index: {}]   ;;  %s275_s1 = inlined_call_operand.hbm [shape: f32[8,128], index: 1, kind: input, shape index: {}]   ;;  %s276_s2 = inlined_call_operand.hbm [shape: f32[8,128], index: 2, kind: input, shape index: {}]   ;;  %s277_s3 = inlined_call_operand.hbm [shape: f32[2,8,128], index: 3, kind: output, shape index: {}]  }
   0x1   :  { %9 = vsyncpa [#allocation6], 0  ;;  %s29_s14 = sshll.u32 %s275_s1, 4  ;;  %s30_s14 = int_to_ptr.hbm [resolvable:$true] %s29_s14 }
   0x2   :  { %10 = vsyncpa [#allocation4], 0  ;;  %s220_s15 = smov [#allocation5]   ;;  %s15_s19 = sshll.u32 %s274_s0, 4  ;;  %s16_s19 = int_to_ptr.hbm [resolvable:$true] %s15_s19 }
   0x3   :  { %s31_s16 = sshll.u32 %s220_s15, 4  ;;  %s221_s20 = smov [#allocation2]   ;;  %s32_s16 = int_to_ptr.vmem [resolvable:$true] %s31_s16 }
   0x4   :  { %34 = dma.hbm_to_vmem [thread:$0]  %s30_s14, 128, %s32_s16, [#allocation6]  }
   0x5   :  { %s17_s21 = sshll.u32 %s221_s20, 4  ;;  %s222_s22 = smov 128   ;;  %s18_s21 = int_to_ptr.vmem [resolvable:$true] %s17_s21 }
   0x6   :  { %s223_s23 = smov 8   ;;  %s40_s25 = sshll.u32 %s276_s2, 4  ;;  %s41_s25 = int_to_ptr.hbm [resolvable:$true] %s40_s25 }
   0x7   :  { %23 = dma.hbm_to_vmem [thread:$0]  %s16_s19, 256, %s18_s21, [#allocation3], %s222_s22, %s222_s22, %s223_s23  }
   0x8   :  { %s224_s26 = smov [#allocation7]  }
   0x9   :  { %s42_s27 = sshll.u32 %s224_s26, 4  ;;  %s43_s27 = int_to_ptr.vmem [resolvable:$true] %s42_s27 }
   0xa   :  { %45 = dma.hbm_to_vmem [thread:$0]  %s41_s25, 128, %s43_s27, [#allocation6]  }
   0xb   :  { %214 = dma.done.wait [#allocation3], 256  }
   0xc   :  { %215 = vsyncadd [#allocation3], 4294967040 }
   0xd   :  { %216 = dma.done.wait [#allocation6], 256  }
   0xe   :  { %217 = vsyncadd [#allocation6], 4294967040  ;;  %v58_v0 = vld [vmem:[#allocation2] sm:$0xff]  ;;  %s225_s0 = smov 16   ;;  %s226_s28 = smov 112   ;;  %v59_v1 = vld [vmem:[#allocation2 + $0x8] sm:$0xff]  ;;  %v76_v2 = vlaneseq }
   0xf   :  { %70 = vrot.lane.b32.xlu1 %v58_v0, %s225_s0  ;;  %64 = vrot.lane.b32.xlu0 %v58_v0, %s226_s28  ;;  %v60_v5 = vld [vmem:[#allocation5] sm:$0xff]  ;;  %v61_v7 = vld [vmem:[#allocation7] sm:$0xff]  ;;  %s227_s2 = smov [#allocation8]   ;;  %s96_s5 = sshll.u32 %s277_s3, 4  ;;  %s97_s5 = int_to_ptr.hbm [resolvable:$true] %s96_s5 }
  0x10   :  { %v77_v3 = vand.u32 127, %v76_v2  ;;  %v82_v8 = vmul.f32 %v60_v5, %v58_v0  ;;  %v83_v14 = vmul.f32 %v60_v5, %v59_v1  ;;  %s94_s29 = sshll.u32 %s227_s2, 4  ;;  %s95_s29 = int_to_ptr.vmem [resolvable:$true] %s94_s29 }
  0x12   :  { %v78_v4 = vand.u32 31, %v77_v3 }
  0x14   :  { %vm260_vm0 = vcmp.lt.s32.totalorder %v78_v4, 16 }
  0x17   :  { %72 = vrot.lane.b32.xlu1 %v59_v1, %s225_s0  ;;  %66 = vrot.lane.b32.xlu0 %v59_v1, %s226_s28 }
  0x81   :  { %v71_v9 = vpop.permute.xlu1 %70  ;;  %v65_v10 = vpop.permute.xlu0 %64 }
  0x82   :  { %v80_v11 = vsel %vm260_vm0, %v65_v10, %v71_v9 }
  0x83   :  { %v84_v12 = vmul.f32 %v80_v11, %v61_v7 }
  0x85   :  { %v86_v13 = vadd.f32 %v84_v12, %v82_v8 }
  0x87   :  { %88 = vst [vmem:[#allocation8] sm:$0xff] %v86_v13 }
  0x89   :  { %v73_v15 = vpop.permute.xlu1 %72  ;;  %v67_v16 = vpop.permute.xlu0 %66 }
  0x8a   :  { %v81_v17 = vsel %vm260_vm0, %v67_v16, %v73_v15 }
  0x8b   :  { %v85_v18 = vmul.f32 %v81_v17, %v61_v7 }
  0x8d   :  { %v87_v19 = vadd.f32 %v85_v18, %v83_v14 }
  0x8f   :  { %89 = vst [vmem:[#allocation8 + $0x8] sm:$0xff] %v87_v19 }
  0x90   :  { %102 = dma.vmem_to_hbm [thread:$0]  %s95_s29, 256, %s97_s5, [#allocation4], %s222_s22, %s222_s22, %s223_s23  }
  0x91   :  { %218 = dma.done.wait [#allocation4], 256  }
  0x92   :  { %219 = vsyncadd [#allocation4], 4294967040 }
  0x93   :  { %107 = vsyncpa [#allocation3], 1 }
  0x94   :  { %108 = vsyncpa [#allocation6], 1 }
  0x95   :  { %109 = vsyncpa [#allocation4], 1 }

</bundles_post_ra>
